<compile_context>
chip_gen: v5e
topology: v5e:2x2
jax: 0.10.0
libtpu: 0.0.40
codegen_flags: <defaults>
</compile_context>

<pallas_src>
import jax
import jax.numpy as jnp
from jax.experimental import pallas as pl
from jax.experimental.pallas import tpu as pltpu

WINDOW = 5     # input_size
HIDDEN = 10    # hidden_size
OUT = 1        # output_size
SUB = 8        # sublanes
LANE = 128     # lanes


# --------------------------------------------------------------------------
# Kernel: all-VPU, resident SMEM weights, lane-dense in/out.
# --------------------------------------------------------------------------
def _mlp_batched_kernel(x_ref, w1_ref, b1_ref, w2_ref, b2_ref, o_ref):
    # x_ref : VMEM (window, row_tile, 128)  -- k on leading axis, batch on (sublane, lane)
    # w1_ref: SMEM (hidden, window)   PyTorch layout W1[j, k]
    # b1_ref: SMEM (hidden,)
    # w2_ref: SMEM (hidden,)          W2[0, j]
    # b2_ref: SMEM (1,)
    # o_ref : VMEM (row_tile, 128)    lane-dense output slab
    window = x_ref.shape[0]
    hidden = w1_ref.shape[0]

    xs = [x_ref[k] for k in range(window)]            # 5 loads of (row_tile, 128)
    acc = jnp.zeros(o_ref.shape, jnp.float32)
    for j in range(hidden):                           # fully unrolled: ~60 VPU FMAs
        h = w1_ref[j, 0] * xs[0] + b1_ref[j]          # scalar-broadcast FMA (VPU)
        for k in range(1, window):
            h = h + w1_ref[j, k] * xs[k]
        acc = acc + w2_ref[j] * jnp.maximum(h, 0.0)   # ReLU + layer-2 FMA (VPU)
    o_ref[...] = acc + b2_ref[0]


# --------------------------------------------------------------------------
# Batched wrapper: 1-D grid over the batch, weights resident in SMEM.
# --------------------------------------------------------------------------
def _forward_batch_impl(windows, w1_s, b1_s, w2_s, b2_s, *, row_tile):
    assert row_tile % SUB == 0
    b, window = windows.shape
    hidden = w1_s.shape[0]
    chunk = row_tile * LANE                       # windows per grid step
    bp = ((b + chunk - 1) // chunk) * chunk       # static under jit
    rows = bp // LANE

    x = windows.astype(jnp.float32)
    if bp != b:
        x = jnp.pad(x, ((0, bp - b), (0, 0)))     # zero-pad tail windows (inert)
    # (window, rows, 128): window i -> slab[:, i // 128, i % 128]
    x3 = x.reshape(rows, LANE, window).transpose(2, 0, 1)

    grid = (rows // row_tile,)
    flops = 2 * bp * (window * hidden + hidden)
    bytes_acc = 4 * (window + 1) * bp + 4 * (hidden * window + 2 * hidden + 1)

    out = pl.pallas_call(
        _mlp_batched_kernel,
        out_shape=jax.ShapeDtypeStruct((rows, LANE), jnp.float32),
        grid=grid,
        in_specs=[
            # stream compact x tiles: (window, row_tile, 128)
            pl.BlockSpec((window, row_tile, LANE), lambda i: (0, i, 0)),
            pl.BlockSpec(memory_space=pltpu.MemorySpace.SMEM),   # W1 (hidden, window)
            pl.BlockSpec(memory_space=pltpu.MemorySpace.SMEM),   # b1 (hidden,)
            pl.BlockSpec(memory_space=pltpu.MemorySpace.SMEM),   # w2 (hidden,)
            pl.BlockSpec(memory_space=pltpu.MemorySpace.SMEM),   # b2 (1,)
        ],
        out_specs=pl.BlockSpec((row_tile, LANE), lambda i: (i, 0)),  # lane-dense
        compiler_params=pltpu.CompilerParams(
            dimension_semantics=("parallel",)),   # v7x: split grid over 2 TCs
        cost_estimate=pl.CostEstimate(
            flops=flops, transcendentals=0, bytes_accessed=bytes_acc),
    )(x3, w1_s, b1_s, w2_s, b2_s)

    return out.reshape(bp)[:b]                    # drop padded tail slots


_forward_batch = jax.jit(_forward_batch_impl, static_argnames=("row_tile",))


def _forward_single_impl(x_win, w1_s, b1_s, w2_s, b2_s):
    # Single window routed through the same kernel (smallest tile, grid=1);
    # the pad/reshape/transpose/slice all fuse under this jit -> one dispatch.
    out = _forward_batch_impl(x_win[None, :], w1_s, b1_s, w2_s, b2_s, row_tile=SUB)
    return out[0]


_forward_single = jax.jit(_forward_single_impl)


class SlidingWindowMLPPallas:
    """JAX/Pallas port of SlidingWindowMLP.  Deterministic synthetic weights."""

    def __init__(self, input_size=WINDOW, hidden_size=HIDDEN, output_size=OUT,
                 key=jax.random.PRNGKey(0), row_tile=32):
        self.window = input_size
        self.row_tile = row_tile            # row_tile * 128 windows per grid step
        k1, k2, k3, k4 = jax.random.split(key, 4)
        # PyTorch nn.Linear convention: weight is (out_features, in_features).
        bound1 = 1.0 / jnp.sqrt(input_size)
        bound2 = 1.0 / jnp.sqrt(hidden_size)
        self.w1 = jax.random.uniform(k1, (hidden_size, input_size),
                                     minval=-bound1, maxval=bound1, dtype=jnp.float32)
        self.b1 = jax.random.uniform(k2, (hidden_size,),
                                     minval=-bound1, maxval=bound1, dtype=jnp.float32)
        self.w2 = jax.random.uniform(k3, (output_size, hidden_size),
                                     minval=-bound2, maxval=bound2, dtype=jnp.float32)
        self.b2 = jax.random.uniform(k4, (output_size,),
                                     minval=-bound2, maxval=bound2, dtype=jnp.float32)

        # SMEM-resident parameter copies (no padding needed for this layout).
        self.w1_s = self.w1                                   # (hidden, window)
        self.b1_s = self.b1                                   # (hidden,)
        self.w2_s = self.w2[0]                                # (hidden,)
        self.b2_s = self.b2.reshape((1,)).astype(jnp.float32)  # (1,)

    # ---- window extraction: single device-side stack, no per-scalar sync ----
    def _window(self, y_history):
        hist = list(y_history)[-self.window:]
        n = len(hist)
        if n == 0:
            return jnp.zeros((self.window,), jnp.float32)
        vals = jnp.stack([jnp.asarray(v, dtype=jnp.float32).reshape(()) for v in hist])
        pad = self.window - n
        if pad:
            vals = jnp.concatenate([jnp.zeros((pad,), jnp.float32), vals])
        return vals

    def __call__(self, y_history):
        x = self._window(y_history)
        return _forward_single(x, self.w1_s, self.b1_s, self.w2_s, self.b2_s)

    def predict_batch(self, windows):
        """Batched throughput path: windows is (B, window) f32."""
        windows = jnp.asarray(windows, jnp.float32)
        return _forward_batch(windows, self.w1_s, self.b1_s, self.w2_s,
                              self.b2_s, row_tile=self.row_tile)

    # ---- pure-JAX references ----
    def reference(self, y_history):
        x = self._window(y_history)
        h = jnp.maximum(self.w1 @ x + self.b1, 0.0)
        return (self.w2 @ h + self.b2).squeeze()

    def reference_batch(self, windows):
        windows = jnp.asarray(windows, jnp.float32)
        h = jnp.maximum(windows @ self.w1.T + self.b1, 0.0)
        return (h @ self.w2.T + self.b2)[:, 0]


if __name__ == "__main__":
    key = jax.random.PRNGKey(0)
    # row_tile=8 -> 1024 windows per grid step; the batch case below gives a
    # multi-step grid and exercises the padded tail.
    model = SlidingWindowMLPPallas(key=key, row_tile=8)

    # Deterministic synthetic observation history (seq=8 scalars).
    hist_key = jax.random.fold_in(key, 123)
    y_history = list(jax.random.normal(hist_key, (8,), dtype=jnp.float32))

    # Case 1: history longer than the window (single-prediction path).
    u = jax.block_until_ready(model(y_history))
    u_ref = model.reference(y_history)
    assert jnp.allclose(u, u_ref, atol=1e-5, rtol=1e-5), (u, u_ref)

    # Case 2: history shorter than the window (exercises zero left-padding).
    short_hist = y_history[:3]
    u2 = jax.block_until_ready(model(short_hist))
    u2_ref = model.reference(short_hist)
    assert jnp.allclose(u2, u2_ref, atol=1e-5, rtol=1e-5), (u2, u2_ref)

    # Case 3: batched path -- 2500 windows -> (5, 24, 128) slab, grid of 3,
    # lane-dense (24,128) output, padded tail slots dropped in the wrapper.
    wkey = jax.random.fold_in(key, 7)
    windows = jax.random.normal(wkey, (2500, WINDOW), dtype=jnp.float32)
    ub = jax.block_until_ready(model.predict_batch(windows))
    ub_ref = model.reference_batch(windows)
    assert ub.shape == (2500,)
    assert jnp.allclose(ub, ub_ref, atol=1e-5, rtol=1e-5)

    print("KERNEL_OK")
</pallas_src>

<mosaic_0001>
module attributes {stable_mosaic.version = 11 : i64} {
  func.func @_mlp_batched_kernel(%arg0: i32, %arg1: memref<5x8x128xf32, #tpu.memory_space<vmem>>, %arg2: memref<10x5xf32, #tpu.memory_space<smem>>, %arg3: memref<10xf32, #tpu.memory_space<smem>>, %arg4: memref<10xf32, #tpu.memory_space<smem>>, %arg5: memref<1xf32, #tpu.memory_space<smem>>, %arg6: memref<8x128xf32, #tpu.memory_space<vmem>>) attributes {dimension_semantics = [#tpu.dimension_semantics<parallel>], iteration_bounds = array<i64: 1>, scalar_prefetch = 0 : i64, scratch_operands = 0 : i64, tpu.core_type = #tpu.core_type<tc>, window_params = [{transform_indices = @transform_0, window_bounds = array<i64: 5, 8, 128>}, {transform_indices = @transform_1, window_bounds = array<i64: 10, 5>}, {transform_indices = @transform_2, window_bounds = array<i64: 10>}, {transform_indices = @transform_3, window_bounds = array<i64: 10>}, {transform_indices = @transform_4, window_bounds = array<i64: 1>}, {transform_indices = @transform_5, window_bounds = array<i64: 8, 128>}]} {
    %c0 = arith.constant 0 : index
    %c0_0 = arith.constant 0 : index
    %c0_1 = arith.constant 0 : index
    %0 = vector.load %arg1[%c0, %c0_0, %c0_1] : memref<5x8x128xf32, #tpu.memory_space<vmem>>, vector<1x8x128xf32>
    %1 = vector.shape_cast %0 : vector<1x8x128xf32> to vector<8x128xf32>
    %c1 = arith.constant 1 : index
    %c0_2 = arith.constant 0 : index
    %c0_3 = arith.constant 0 : index
    %2 = vector.load %arg1[%c1, %c0_2, %c0_3] : memref<5x8x128xf32, #tpu.memory_space<vmem>>, vector<1x8x128xf32>
    %3 = vector.shape_cast %2 : vector<1x8x128xf32> to vector<8x128xf32>
    %c2 = arith.constant 2 : index
    %c0_4 = arith.constant 0 : index
    %c0_5 = arith.constant 0 : index
    %4 = vector.load %arg1[%c2, %c0_4, %c0_5] : memref<5x8x128xf32, #tpu.memory_space<vmem>>, vector<1x8x128xf32>
    %5 = vector.shape_cast %4 : vector<1x8x128xf32> to vector<8x128xf32>
    %c3 = arith.constant 3 : index
    %c0_6 = arith.constant 0 : index
    %c0_7 = arith.constant 0 : index
    %6 = vector.load %arg1[%c3, %c0_6, %c0_7] : memref<5x8x128xf32, #tpu.memory_space<vmem>>, vector<1x8x128xf32>
    %7 = vector.shape_cast %6 : vector<1x8x128xf32> to vector<8x128xf32>
    %c4 = arith.constant 4 : index
    %c0_8 = arith.constant 0 : index
    %c0_9 = arith.constant 0 : index
    %8 = vector.load %arg1[%c4, %c0_8, %c0_9] : memref<5x8x128xf32, #tpu.memory_space<vmem>>, vector<1x8x128xf32>
    %9 = vector.shape_cast %8 : vector<1x8x128xf32> to vector<8x128xf32>
    %cst = arith.constant 0.000000e+00 : f32
    %10 = vector.broadcast %cst : f32 to vector<8x128xf32>
    %c0_10 = arith.constant 0 : index
    %c0_11 = arith.constant 0 : index
    %11 = memref.load %arg2[%c0_10, %c0_11] : memref<10x5xf32, #tpu.memory_space<smem>>
    %12 = vector.broadcast %11 : f32 to vector<8x128xf32>
    %13 = arith.mulf %12, %1 : vector<8x128xf32>
    %c0_12 = arith.constant 0 : index
    %14 = memref.load %arg3[%c0_12] : memref<10xf32, #tpu.memory_space<smem>>
    %15 = vector.broadcast %14 : f32 to vector<8x128xf32>
    %16 = arith.addf %13, %15 : vector<8x128xf32>
    %c0_13 = arith.constant 0 : index
    %c1_14 = arith.constant 1 : index
    %17 = memref.load %arg2[%c0_13, %c1_14] : memref<10x5xf32, #tpu.memory_space<smem>>
    %18 = vector.broadcast %17 : f32 to vector<8x128xf32>
    %19 = arith.mulf %18, %3 : vector<8x128xf32>
    %20 = arith.addf %16, %19 : vector<8x128xf32>
    %c0_15 = arith.constant 0 : index
    %c2_16 = arith.constant 2 : index
    %21 = memref.load %arg2[%c0_15, %c2_16] : memref<10x5xf32, #tpu.memory_space<smem>>
    %22 = vector.broadcast %21 : f32 to vector<8x128xf32>
    %23 = arith.mulf %22, %5 : vector<8x128xf32>
    %24 = arith.addf %20, %23 : vector<8x128xf32>
    %c0_17 = arith.constant 0 : index
    %c3_18 = arith.constant 3 : index
    %25 = memref.load %arg2[%c0_17, %c3_18] : memref<10x5xf32, #tpu.memory_space<smem>>
    %26 = vector.broadcast %25 : f32 to vector<8x128xf32>
    %27 = arith.mulf %26, %7 : vector<8x128xf32>
    %28 = arith.addf %24, %27 : vector<8x128xf32>
    %c0_19 = arith.constant 0 : index
    %c4_20 = arith.constant 4 : index
    %29 = memref.load %arg2[%c0_19, %c4_20] : memref<10x5xf32, #tpu.memory_space<smem>>
    %30 = vector.broadcast %29 : f32 to vector<8x128xf32>
    %31 = arith.mulf %30, %9 : vector<8x128xf32>
    %32 = arith.addf %28, %31 : vector<8x128xf32>
    %c0_21 = arith.constant 0 : index
    %33 = memref.load %arg4[%c0_21] : memref<10xf32, #tpu.memory_space<smem>>
    %cst_22 = arith.constant 0.000000e+00 : f32
    %34 = vector.broadcast %cst_22 : f32 to vector<8x128xf32>
    %35 = arith.maximumf %32, %34 : vector<8x128xf32>
    %36 = vector.broadcast %33 : f32 to vector<8x128xf32>
    %37 = arith.mulf %36, %35 : vector<8x128xf32>
    %38 = arith.addf %10, %37 : vector<8x128xf32>
    %c1_23 = arith.constant 1 : index
    %c0_24 = arith.constant 0 : index
    %39 = memref.load %arg2[%c1_23, %c0_24] : memref<10x5xf32, #tpu.memory_space<smem>>
    %40 = vector.broadcast %39 : f32 to vector<8x128xf32>
    %41 = arith.mulf %40, %1 : vector<8x128xf32>
    %c1_25 = arith.constant 1 : index
    %42 = memref.load %arg3[%c1_25] : memref<10xf32, #tpu.memory_space<smem>>
    %43 = vector.broadcast %42 : f32 to vector<8x128xf32>
    %44 = arith.addf %41, %43 : vector<8x128xf32>
    %c1_26 = arith.constant 1 : index
    %c1_27 = arith.constant 1 : index
    %45 = memref.load %arg2[%c1_26, %c1_27] : memref<10x5xf32, #tpu.memory_space<smem>>
    %46 = vector.broadcast %45 : f32 to vector<8x128xf32>
    %47 = arith.mulf %46, %3 : vector<8x128xf32>
    %48 = arith.addf %44, %47 : vector<8x128xf32>
    %c1_28 = arith.constant 1 : index
    %c2_29 = arith.constant 2 : index
    %49 = memref.load %arg2[%c1_28, %c2_29] : memref<10x5xf32, #tpu.memory_space<smem>>
    %50 = vector.broadcast %49 : f32 to vector<8x128xf32>
    %51 = arith.mulf %50, %5 : vector<8x128xf32>
    %52 = arith.addf %48, %51 : vector<8x128xf32>
    %c1_30 = arith.constant 1 : index
    %c3_31 = arith.constant 3 : index
    %53 = memref.load %arg2[%c1_30, %c3_31] : memref<10x5xf32, #tpu.memory_space<smem>>
    %54 = vector.broadcast %53 : f32 to vector<8x128xf32>
    %55 = arith.mulf %54, %7 : vector<8x128xf32>
    %56 = arith.addf %52, %55 : vector<8x128xf32>
    %c1_32 = arith.constant 1 : index
    %c4_33 = arith.constant 4 : index
    %57 = memref.load %arg2[%c1_32, %c4_33] : memref<10x5xf32, #tpu.memory_space<smem>>
    %58 = vector.broadcast %57 : f32 to vector<8x128xf32>
    %59 = arith.mulf %58, %9 : vector<8x128xf32>
    %60 = arith.addf %56, %59 : vector<8x128xf32>
    %c1_34 = arith.constant 1 : index
    %61 = memref.load %arg4[%c1_34] : memref<10xf32, #tpu.memory_space<smem>>
    %cst_35 = arith.constant 0.000000e+00 : f32
    %62 = vector.broadcast %cst_35 : f32 to vector<8x128xf32>
    %63 = arith.maximumf %60, %62 : vector<8x128xf32>
    %64 = vector.broadcast %61 : f32 to vector<8x128xf32>
    %65 = arith.mulf %64, %63 : vector<8x128xf32>
    %66 = arith.addf %38, %65 : vector<8x128xf32>
    %c2_36 = arith.constant 2 : index
    %c0_37 = arith.constant 0 : index
    %67 = memref.load %arg2[%c2_36, %c0_37] : memref<10x5xf32, #tpu.memory_space<smem>>
    %68 = vector.broadcast %67 : f32 to vector<8x128xf32>
    %69 = arith.mulf %68, %1 : vector<8x128xf32>
    %c2_38 = arith.constant 2 : index
    %70 = memref.load %arg3[%c2_38] : memref<10xf32, #tpu.memory_space<smem>>
    %71 = vector.broadcast %70 : f32 to vector<8x128xf32>
    %72 = arith.addf %69, %71 : vector<8x128xf32>
    %c2_39 = arith.constant 2 : index
    %c1_40 = arith.constant 1 : index
    %73 = memref.load %arg2[%c2_39, %c1_40] : memref<10x5xf32, #tpu.memory_space<smem>>
    %74 = vector.broadcast %73 : f32 to vector<8x128xf32>
    %75 = arith.mulf %74, %3 : vector<8x128xf32>
    %76 = arith.addf %72, %75 : vector<8x128xf32>
    %c2_41 = arith.constant 2 : index
    %c2_42 = arith.constant 2 : index
    %77 = memref.load %arg2[%c2_41, %c2_42] : memref<10x5xf32, #tpu.memory_space<smem>>
    %78 = vector.broadcast %77 : f32 to vector<8x128xf32>
    %79 = arith.mulf %78, %5 : vector<8x128xf32>
    %80 = arith.addf %76, %79 : vector<8x128xf32>
    %c2_43 = arith.constant 2 : index
    %c3_44 = arith.constant 3 : index
    %81 = memref.load %arg2[%c2_43, %c3_44] : memref<10x5xf32, #tpu.memory_space<smem>>
    %82 = vector.broadcast %81 : f32 to vector<8x128xf32>
    %83 = arith.mulf %82, %7 : vector<8x128xf32>
    %84 = arith.addf %80, %83 : vector<8x128xf32>
    %c2_45 = arith.constant 2 : index
    %c4_46 = arith.constant 4 : index
    %85 = memref.load %arg2[%c2_45, %c4_46] : memref<10x5xf32, #tpu.memory_space<smem>>
    %86 = vector.broadcast %85 : f32 to vector<8x128xf32>
    %87 = arith.mulf %86, %9 : vector<8x128xf32>
    %88 = arith.addf %84, %87 : vector<8x128xf32>
    %c2_47 = arith.constant 2 : index
    %89 = memref.load %arg4[%c2_47] : memref<10xf32, #tpu.memory_space<smem>>
    %cst_48 = arith.constant 0.000000e+00 : f32
    %90 = vector.broadcast %cst_48 : f32 to vector<8x128xf32>
    %91 = arith.maximumf %88, %90 : vector<8x128xf32>
    %92 = vector.broadcast %89 : f32 to vector<8x128xf32>
    %93 = arith.mulf %92, %91 : vector<8x128xf32>
    %94 = arith.addf %66, %93 : vector<8x128xf32>
    %c3_49 = arith.constant 3 : index
    %c0_50 = arith.constant 0 : index
    %95 = memref.load %arg2[%c3_49, %c0_50] : memref<10x5xf32, #tpu.memory_space<smem>>
    %96 = vector.broadcast %95 : f32 to vector<8x128xf32>
    %97 = arith.mulf %96, %1 : vector<8x128xf32>
    %c3_51 = arith.constant 3 : index
    %98 = memref.load %arg3[%c3_51] : memref<10xf32, #tpu.memory_space<smem>>
    %99 = vector.broadcast %98 : f32 to vector<8x128xf32>
    %100 = arith.addf %97, %99 : vector<8x128xf32>
    %c3_52 = arith.constant 3 : index
    %c1_53 = arith.constant 1 : index
    %101 = memref.load %arg2[%c3_52, %c1_53] : memref<10x5xf32, #tpu.memory_space<smem>>
    %102 = vector.broadcast %101 : f32 to vector<8x128xf32>
    %103 = arith.mulf %102, %3 : vector<8x128xf32>
    %104 = arith.addf %100, %103 : vector<8x128xf32>
    %c3_54 = arith.constant 3 : index
    %c2_55 = arith.constant 2 : index
    %105 = memref.load %arg2[%c3_54, %c2_55] : memref<10x5xf32, #tpu.memory_space<smem>>
    %106 = vector.broadcast %105 : f32 to vector<8x128xf32>
    %107 = arith.mulf %106, %5 : vector<8x128xf32>
    %108 = arith.addf %104, %107 : vector<8x128xf32>
    %c3_56 = arith.constant 3 : index
    %c3_57 = arith.constant 3 : index
    %109 = memref.load %arg2[%c3_56, %c3_57] : memref<10x5xf32, #tpu.memory_space<smem>>
    %110 = vector.broadcast %109 : f32 to vector<8x128xf32>
    %111 = arith.mulf %110, %7 : vector<8x128xf32>
    %112 = arith.addf %108, %111 : vector<8x128xf32>
    %c3_58 = arith.constant 3 : index
    %c4_59 = arith.constant 4 : index
    %113 = memref.load %arg2[%c3_58, %c4_59] : memref<10x5xf32, #tpu.memory_space<smem>>
    %114 = vector.broadcast %113 : f32 to vector<8x128xf32>
    %115 = arith.mulf %114, %9 : vector<8x128xf32>
    %116 = arith.addf %112, %115 : vector<8x128xf32>
    %c3_60 = arith.constant 3 : index
    %117 = memref.load %arg4[%c3_60] : memref<10xf32, #tpu.memory_space<smem>>
    %cst_61 = arith.constant 0.000000e+00 : f32
    %118 = vector.broadcast %cst_61 : f32 to vector<8x128xf32>
    %119 = arith.maximumf %116, %118 : vector<8x128xf32>
    %120 = vector.broadcast %117 : f32 to vector<8x128xf32>
    %121 = arith.mulf %120, %119 : vector<8x128xf32>
    %122 = arith.addf %94, %121 : vector<8x128xf32>
    %c4_62 = arith.constant 4 : index
    %c0_63 = arith.constant 0 : index
    %123 = memref.load %arg2[%c4_62, %c0_63] : memref<10x5xf32, #tpu.memory_space<smem>>
    %124 = vector.broadcast %123 : f32 to vector<8x128xf32>
    %125 = arith.mulf %124, %1 : vector<8x128xf32>
    %c4_64 = arith.constant 4 : index
    %126 = memref.load %arg3[%c4_64] : memref<10xf32, #tpu.memory_space<smem>>
    %127 = vector.broadcast %126 : f32 to vector<8x128xf32>
    %128 = arith.addf %125, %127 : vector<8x128xf32>
    %c4_65 = arith.constant 4 : index
    %c1_66 = arith.constant 1 : index
    %129 = memref.load %arg2[%c4_65, %c1_66] : memref<10x5xf32, #tpu.memory_space<smem>>
    %130 = vector.broadcast %129 : f32 to vector<8x128xf32>
    %131 = arith.mulf %130, %3 : vector<8x128xf32>
    %132 = arith.addf %128, %131 : vector<8x128xf32>
    %c4_67 = arith.constant 4 : index
    %c2_68 = arith.constant 2 : index
    %133 = memref.load %arg2[%c4_67, %c2_68] : memref<10x5xf32, #tpu.memory_space<smem>>
    %134 = vector.broadcast %133 : f32 to vector<8x128xf32>
    %135 = arith.mulf %134, %5 : vector<8x128xf32>
    %136 = arith.addf %132, %135 : vector<8x128xf32>
    %c4_69 = arith.constant 4 : index
    %c3_70 = arith.constant 3 : index
    %137 = memref.load %arg2[%c4_69, %c3_70] : memref<10x5xf32, #tpu.memory_space<smem>>
    %138 = vector.broadcast %137 : f32 to vector<8x128xf32>
    %139 = arith.mulf %138, %7 : vector<8x128xf32>
    %140 = arith.addf %136, %139 : vector<8x128xf32>
    %c4_71 = arith.constant 4 : index
    %c4_72 = arith.constant 4 : index
    %141 = memref.load %arg2[%c4_71, %c4_72] : memref<10x5xf32, #tpu.memory_space<smem>>
    %142 = vector.broadcast %141 : f32 to vector<8x128xf32>
    %143 = arith.mulf %142, %9 : vector<8x128xf32>
    %144 = arith.addf %140, %143 : vector<8x128xf32>
    %c4_73 = arith.constant 4 : index
    %145 = memref.load %arg4[%c4_73] : memref<10xf32, #tpu.memory_space<smem>>
    %cst_74 = arith.constant 0.000000e+00 : f32
    %146 = vector.broadcast %cst_74 : f32 to vector<8x128xf32>
    %147 = arith.maximumf %144, %146 : vector<8x128xf32>
    %148 = vector.broadcast %145 : f32 to vector<8x128xf32>
    %149 = arith.mulf %148, %147 : vector<8x128xf32>
    %150 = arith.addf %122, %149 : vector<8x128xf32>
    %c5 = arith.constant 5 : index
    %c0_75 = arith.constant 0 : index
    %151 = memref.load %arg2[%c5, %c0_75] : memref<10x5xf32, #tpu.memory_space<smem>>
    %152 = vector.broadcast %151 : f32 to vector<8x128xf32>
    %153 = arith.mulf %152, %1 : vector<8x128xf32>
    %c5_76 = arith.constant 5 : index
    %154 = memref.load %arg3[%c5_76] : memref<10xf32, #tpu.memory_space<smem>>
    %155 = vector.broadcast %154 : f32 to vector<8x128xf32>
    %156 = arith.addf %153, %155 : vector<8x128xf32>
    %c5_77 = arith.constant 5 : index
    %c1_78 = arith.constant 1 : index
    %157 = memref.load %arg2[%c5_77, %c1_78] : memref<10x5xf32, #tpu.memory_space<smem>>
    %158 = vector.broadcast %157 : f32 to vector<8x128xf32>
    %159 = arith.mulf %158, %3 : vector<8x128xf32>
    %160 = arith.addf %156, %159 : vector<8x128xf32>
    %c5_79 = arith.constant 5 : index
    %c2_80 = arith.constant 2 : index
    %161 = memref.load %arg2[%c5_79, %c2_80] : memref<10x5xf32, #tpu.memory_space<smem>>
    %162 = vector.broadcast %161 : f32 to vector<8x128xf32>
    %163 = arith.mulf %162, %5 : vector<8x128xf32>
    %164 = arith.addf %160, %163 : vector<8x128xf32>
    %c5_81 = arith.constant 5 : index
    %c3_82 = arith.constant 3 : index
    %165 = memref.load %arg2[%c5_81, %c3_82] : memref<10x5xf32, #tpu.memory_space<smem>>
    %166 = vector.broadcast %165 : f32 to vector<8x128xf32>
    %167 = arith.mulf %166, %7 : vector<8x128xf32>
    %168 = arith.addf %164, %167 : vector<8x128xf32>
    %c5_83 = arith.constant 5 : index
    %c4_84 = arith.constant 4 : index
    %169 = memref.load %arg2[%c5_83, %c4_84] : memref<10x5xf32, #tpu.memory_space<smem>>
    %170 = vector.broadcast %169 : f32 to vector<8x128xf32>
    %171 = arith.mulf %170, %9 : vector<8x128xf32>
    %172 = arith.addf %168, %171 : vector<8x128xf32>
    %c5_85 = arith.constant 5 : index
    %173 = memref.load %arg4[%c5_85] : memref<10xf32, #tpu.memory_space<smem>>
    %cst_86 = arith.constant 0.000000e+00 : f32
    %174 = vector.broadcast %cst_86 : f32 to vector<8x128xf32>
    %175 = arith.maximumf %172, %174 : vector<8x128xf32>
    %176 = vector.broadcast %173 : f32 to vector<8x128xf32>
    %177 = arith.mulf %176, %175 : vector<8x128xf32>
    %178 = arith.addf %150, %177 : vector<8x128xf32>
    %c6 = arith.constant 6 : index
    %c0_87 = arith.constant 0 : index
    %179 = memref.load %arg2[%c6, %c0_87] : memref<10x5xf32, #tpu.memory_space<smem>>
    %180 = vector.broadcast %179 : f32 to vector<8x128xf32>
    %181 = arith.mulf %180, %1 : vector<8x128xf32>
    %c6_88 = arith.constant 6 : index
    %182 = memref.load %arg3[%c6_88] : memref<10xf32, #tpu.memory_space<smem>>
    %183 = vector.broadcast %182 : f32 to vector<8x128xf32>
    %184 = arith.addf %181, %183 : vector<8x128xf32>
    %c6_89 = arith.constant 6 : index
    %c1_90 = arith.constant 1 : index
    %185 = memref.load %arg2[%c6_89, %c1_90] : memref<10x5xf32, #tpu.memory_space<smem>>
    %186 = vector.broadcast %185 : f32 to vector<8x128xf32>
    %187 = arith.mulf %186, %3 : vector<8x128xf32>
    %188 = arith.addf %184, %187 : vector<8x128xf32>
    %c6_91 = arith.constant 6 : index
    %c2_92 = arith.constant 2 : index
    %189 = memref.load %arg2[%c6_91, %c2_92] : memref<10x5xf32, #tpu.memory_space<smem>>
    %190 = vector.broadcast %189 : f32 to vector<8x128xf32>
    %191 = arith.mulf %190, %5 : vector<8x128xf32>
    %192 = arith.addf %188, %191 : vector<8x128xf32>
    %c6_93 = arith.constant 6 : index
    %c3_94 = arith.constant 3 : index
    %193 = memref.load %arg2[%c6_93, %c3_94] : memref<10x5xf32, #tpu.memory_space<smem>>
    %194 = vector.broadcast %193 : f32 to vector<8x128xf32>
    %195 = arith.mulf %194, %7 : vector<8x128xf32>
    %196 = arith.addf %192, %195 : vector<8x128xf32>
    %c6_95 = arith.constant 6 : index
    %c4_96 = arith.constant 4 : index
    %197 = memref.load %arg2[%c6_95, %c4_96] : memref<10x5xf32, #tpu.memory_space<smem>>
    %198 = vector.broadcast %197 : f32 to vector<8x128xf32>
    %199 = arith.mulf %198, %9 : vector<8x128xf32>
    %200 = arith.addf %196, %199 : vector<8x128xf32>
    %c6_97 = arith.constant 6 : index
    %201 = memref.load %arg4[%c6_97] : memref<10xf32, #tpu.memory_space<smem>>
    %cst_98 = arith.constant 0.000000e+00 : f32
    %202 = vector.broadcast %cst_98 : f32 to vector<8x128xf32>
    %203 = arith.maximumf %200, %202 : vector<8x128xf32>
    %204 = vector.broadcast %201 : f32 to vector<8x128xf32>
    %205 = arith.mulf %204, %203 : vector<8x128xf32>
    %206 = arith.addf %178, %205 : vector<8x128xf32>
    %c7 = arith.constant 7 : index
    %c0_99 = arith.constant 0 : index
    %207 = memref.load %arg2[%c7, %c0_99] : memref<10x5xf32, #tpu.memory_space<smem>>
    %208 = vector.broadcast %207 : f32 to vector<8x128xf32>
    %209 = arith.mulf %208, %1 : vector<8x128xf32>
    %c7_100 = arith.constant 7 : index
    %210 = memref.load %arg3[%c7_100] : memref<10xf32, #tpu.memory_space<smem>>
    %211 = vector.broadcast %210 : f32 to vector<8x128xf32>
    %212 = arith.addf %209, %211 : vector<8x128xf32>
    %c7_101 = arith.constant 7 : index
    %c1_102 = arith.constant 1 : index
    %213 = memref.load %arg2[%c7_101, %c1_102] : memref<10x5xf32, #tpu.memory_space<smem>>
    %214 = vector.broadcast %213 : f32 to vector<8x128xf32>
    %215 = arith.mulf %214, %3 : vector<8x128xf32>
    %216 = arith.addf %212, %215 : vector<8x128xf32>
    %c7_103 = arith.constant 7 : index
    %c2_104 = arith.constant 2 : index
    %217 = memref.load %arg2[%c7_103, %c2_104] : memref<10x5xf32, #tpu.memory_space<smem>>
    %218 = vector.broadcast %217 : f32 to vector<8x128xf32>
    %219 = arith.mulf %218, %5 : vector<8x128xf32>
    %220 = arith.addf %216, %219 : vector<8x128xf32>
    %c7_105 = arith.constant 7 : index
    %c3_106 = arith.constant 3 : index
    %221 = memref.load %arg2[%c7_105, %c3_106] : memref<10x5xf32, #tpu.memory_space<smem>>
    %222 = vector.broadcast %221 : f32 to vector<8x128xf32>
    %223 = arith.mulf %222, %7 : vector<8x128xf32>
    %224 = arith.addf %220, %223 : vector<8x128xf32>
    %c7_107 = arith.constant 7 : index
    %c4_108 = arith.constant 4 : index
    %225 = memref.load %arg2[%c7_107, %c4_108] : memref<10x5xf32, #tpu.memory_space<smem>>
    %226 = vector.broadcast %225 : f32 to vector<8x128xf32>
    %227 = arith.mulf %226, %9 : vector<8x128xf32>
    %228 = arith.addf %224, %227 : vector<8x128xf32>
    %c7_109 = arith.constant 7 : index
    %229 = memref.load %arg4[%c7_109] : memref<10xf32, #tpu.memory_space<smem>>
    %cst_110 = arith.constant 0.000000e+00 : f32
    %230 = vector.broadcast %cst_110 : f32 to vector<8x128xf32>
    %231 = arith.maximumf %228, %230 : vector<8x128xf32>
    %232 = vector.broadcast %229 : f32 to vector<8x128xf32>
    %233 = arith.mulf %232, %231 : vector<8x128xf32>
    %234 = arith.addf %206, %233 : vector<8x128xf32>
    %c8 = arith.constant 8 : index
    %c0_111 = arith.constant 0 : index
    %235 = memref.load %arg2[%c8, %c0_111] : memref<10x5xf32, #tpu.memory_space<smem>>
    %236 = vector.broadcast %235 : f32 to vector<8x128xf32>
    %237 = arith.mulf %236, %1 : vector<8x128xf32>
    %c8_112 = arith.constant 8 : index
    %238 = memref.load %arg3[%c8_112] : memref<10xf32, #tpu.memory_space<smem>>
    %239 = vector.broadcast %238 : f32 to vector<8x128xf32>
    %240 = arith.addf %237, %239 : vector<8x128xf32>
    %c8_113 = arith.constant 8 : index
    %c1_114 = arith.constant 1 : index
    %241 = memref.load %arg2[%c8_113, %c1_114] : memref<10x5xf32, #tpu.memory_space<smem>>
    %242 = vector.broadcast %241 : f32 to vector<8x128xf32>
    %243 = arith.mulf %242, %3 : vector<8x128xf32>
    %244 = arith.addf %240, %243 : vector<8x128xf32>
    %c8_115 = arith.constant 8 : index
    %c2_116 = arith.constant 2 : index
    %245 = memref.load %arg2[%c8_115, %c2_116] : memref<10x5xf32, #tpu.memory_space<smem>>
    %246 = vector.broadcast %245 : f32 to vector<8x128xf32>
    %247 = arith.mulf %246, %5 : vector<8x128xf32>
    %248 = arith.addf %244, %247 : vector<8x128xf32>
    %c8_117 = arith.constant 8 : index
    %c3_118 = arith.constant 3 : index
    %249 = memref.load %arg2[%c8_117, %c3_118] : memref<10x5xf32, #tpu.memory_space<smem>>
    %250 = vector.broadcast %249 : f32 to vector<8x128xf32>
    %251 = arith.mulf %250, %7 : vector<8x128xf32>
    %252 = arith.addf %248, %251 : vector<8x128xf32>
    %c8_119 = arith.constant 8 : index
    %c4_120 = arith.constant 4 : index
    %253 = memref.load %arg2[%c8_119, %c4_120] : memref<10x5xf32, #tpu.memory_space<smem>>
    %254 = vector.broadcast %253 : f32 to vector<8x128xf32>
    %255 = arith.mulf %254, %9 : vector<8x128xf32>
    %256 = arith.addf %252, %255 : vector<8x128xf32>
    %c8_121 = arith.constant 8 : index
    %257 = memref.load %arg4[%c8_121] : memref<10xf32, #tpu.memory_space<smem>>
    %cst_122 = arith.constant 0.000000e+00 : f32
    %258 = vector.broadcast %cst_122 : f32 to vector<8x128xf32>
    %259 = arith.maximumf %256, %258 : vector<8x128xf32>
    %260 = vector.broadcast %257 : f32 to vector<8x128xf32>
    %261 = arith.mulf %260, %259 : vector<8x128xf32>
    %262 = arith.addf %234, %261 : vector<8x128xf32>
    %c9 = arith.constant 9 : index
    %c0_123 = arith.constant 0 : index
    %263 = memref.load %arg2[%c9, %c0_123] : memref<10x5xf32, #tpu.memory_space<smem>>
    %264 = vector.broadcast %263 : f32 to vector<8x128xf32>
    %265 = arith.mulf %264, %1 : vector<8x128xf32>
    %c9_124 = arith.constant 9 : index
    %266 = memref.load %arg3[%c9_124] : memref<10xf32, #tpu.memory_space<smem>>
    %267 = vector.broadcast %266 : f32 to vector<8x128xf32>
    %268 = arith.addf %265, %267 : vector<8x128xf32>
    %c9_125 = arith.constant 9 : index
    %c1_126 = arith.constant 1 : index
    %269 = memref.load %arg2[%c9_125, %c1_126] : memref<10x5xf32, #tpu.memory_space<smem>>
    %270 = vector.broadcast %269 : f32 to vector<8x128xf32>
    %271 = arith.mulf %270, %3 : vector<8x128xf32>
    %272 = arith.addf %268, %271 : vector<8x128xf32>
    %c9_127 = arith.constant 9 : index
    %c2_128 = arith.constant 2 : index
    %273 = memref.load %arg2[%c9_127, %c2_128] : memref<10x5xf32, #tpu.memory_space<smem>>
    %274 = vector.broadcast %273 : f32 to vector<8x128xf32>
    %275 = arith.mulf %274, %5 : vector<8x128xf32>
    %276 = arith.addf %272, %275 : vector<8x128xf32>
    %c9_129 = arith.constant 9 : index
    %c3_130 = arith.constant 3 : index
    %277 = memref.load %arg2[%c9_129, %c3_130] : memref<10x5xf32, #tpu.memory_space<smem>>
    %278 = vector.broadcast %277 : f32 to vector<8x128xf32>
    %279 = arith.mulf %278, %7 : vector<8x128xf32>
    %280 = arith.addf %276, %279 : vector<8x128xf32>
    %c9_131 = arith.constant 9 : index
    %c4_132 = arith.constant 4 : index
    %281 = memref.load %arg2[%c9_131, %c4_132] : memref<10x5xf32, #tpu.memory_space<smem>>
    %282 = vector.broadcast %281 : f32 to vector<8x128xf32>
    %283 = arith.mulf %282, %9 : vector<8x128xf32>
    %284 = arith.addf %280, %283 : vector<8x128xf32>
    %c9_133 = arith.constant 9 : index
    %285 = memref.load %arg4[%c9_133] : memref<10xf32, #tpu.memory_space<smem>>
    %cst_134 = arith.constant 0.000000e+00 : f32
    %286 = vector.broadcast %cst_134 : f32 to vector<8x128xf32>
    %287 = arith.maximumf %284, %286 : vector<8x128xf32>
    %288 = vector.broadcast %285 : f32 to vector<8x128xf32>
    %289 = arith.mulf %288, %287 : vector<8x128xf32>
    %290 = arith.addf %262, %289 : vector<8x128xf32>
    %c0_135 = arith.constant 0 : index
    %291 = memref.load %arg5[%c0_135] : memref<1xf32, #tpu.memory_space<smem>>
    %292 = vector.broadcast %291 : f32 to vector<8x128xf32>
    %293 = arith.addf %290, %292 : vector<8x128xf32>
    %c0_136 = arith.constant 0 : index
    %c0_137 = arith.constant 0 : index
    %294 = vector.load %arg6[%c0_136, %c0_137] : memref<8x128xf32, #tpu.memory_space<vmem>>, vector<8x128xf32>
    tpu.vector_store %arg6[%c0_136, %c0_137], %293 {strides = array<i32>} : memref<8x128xf32, #tpu.memory_space<vmem>>, vector<8x128xf32>,
    return
  }
  func.func @transform_0(%arg0: i32) -> (i32, i32, i32) {
    %c0_i32 = arith.constant 0 : i32
    %c0_i32_0 = arith.constant 0 : i32
    %c0_i32_1 = arith.constant 0 : i32
    return %c0_i32, %arg0, %c0_i32_0 : i32, i32, i32
  }
  func.func @transform_1(%arg0: i32) -> (i32, i32) {
    %c0_i32 = arith.constant 0 : i32
    %c0_i32_0 = arith.constant 0 : i32
    %c0_i32_1 = arith.constant 0 : i32
    return %c0_i32, %c0_i32_0 : i32, i32
  }
  func.func @transform_2(%arg0: i32) -> i32 {
    %c0_i32 = arith.constant 0 : i32
    %c0_i32_0 = arith.constant 0 : i32
    return %c0_i32 : i32
  }
  func.func @transform_3(%arg0: i32) -> i32 {
    %c0_i32 = arith.constant 0 : i32
    %c0_i32_0 = arith.constant 0 : i32
    return %c0_i32 : i32
  }
  func.func @transform_4(%arg0: i32) -> i32 {
    %c0_i32 = arith.constant 0 : i32
    %c0_i32_0 = arith.constant 0 : i32
    return %c0_i32 : i32
  }
  func.func @transform_5(%arg0: i32) -> (i32, i32) {
    %c0_i32 = arith.constant 0 : i32
    %c0_i32_0 = arith.constant 0 : i32
    return %arg0, %c0_i32 : i32, i32
  }
}

</mosaic_0001>

<bundles_post_ra>
// kernel: _forward_single_impl.1
= control target key start
LH: loop header
LB: loop body
LE: loop exit
PB: predicated region body
PF: predicated region fallthrough
CT: control target
= control target key end

     0   :  { %11 = vsyncpa [#allocation4], 0  ;;  %s694_s0 = inlined_call_operand.vmem [shape: f32[5,8,128], index: 0, kind: input, shape index: {}]   ;;  %s695_s1 = inlined_call_operand.vmem [shape: f32[10,5], index: 1, kind: input, shape index: {}]   ;;  %s696_s2 = inlined_call_operand.vmem [shape: f32[10], index: 2, kind: input, shape index: {}]   ;;  %s697_s3 = inlined_call_operand.vmem [shape: f32[10], index: 3, kind: input, shape index: {}]   ;;  %s698_s4 = inlined_call_operand.<no memory space> [shape: f32[1], index: 4, kind: input, shape index: {}]   ;;  %s699_s5 = inlined_call_operand.vmem [shape: f32[8,128], index: 5, kind: output, shape index: {}]  }
   0x1   :  { %12 = vsyncpa [#allocation6], 0  ;;  %s31_s20 = sshll.u32 %s696_s2, 4  ;;  %s19_s23 = sshll.u32 %s695_s1, 4  ;;  %s32_s20 = int_to_ptr.vmem [resolvable:$true] %s31_s20  ;;  %s20_s23 = int_to_ptr.vmem [resolvable:$true] %s19_s23 }
   0x2   :  { %s464_s24 = smov [#allocation5]   ;;  %s465_s25 = smov [#allocation3]  }
   0x3   :  { %34 = dma.vmem_to_smem %s32_s20, 16, %s464_s24, [#allocation6]  }
   0x4   :  { %s466_s26 = smov 128   ;;  %s467_s27 = smov 8  }
   0x5   :  { %25 = dma.vmem_to_smem %s20_s23, 256, %s465_s25, [#allocation4], %s466_s26, %s466_s26, %s467_s27  }
   0x6   :  { %s40_s30 = sshll.u32 %s697_s3, 4  ;;  %s468_s6 = smov [#allocation7]   ;;  %s41_s30 = int_to_ptr.vmem [resolvable:$true] %s40_s30 }
   0x7   :  { %43 = dma.vmem_to_smem %s41_s30, 16, %s468_s6, [#allocation6]  }
   0x8   :  { %460 = dma.done.wait [#allocation4], 256  }
   0x9   :  { %461 = vsyncadd [#allocation4], 4294967040 }
   0xa   :  { %462 = dma.done.wait [#allocation6], 32  }
   0xb   :  { %463 = vsyncadd [#allocation6], 4294967264 }
   0xc   :  { %58 = sfence }
   0xd   :  { %s68_s1 = sld [smem:[#allocation3]]  ;;  %v523_v0 = vld [vmem:[%s694_s0] sm:$0xff]  ;;  %v535_v4 = vld [vmem:[%s694_s0 + $0x8] sm:$0xff]  ;;  %v548_v12 = vld [vmem:[%s694_s0 + $0x10] sm:$0xff] }
   0xe   :  { %s71_s2 = sld [smem:[#allocation5]]  ;;  %v563_v23 = vld [vmem:[%s694_s0 + $0x18] sm:$0xff]  ;;  %v586_v39 = vld [vmem:[%s694_s0 + $0x20] sm:$0xff] }
   0xf   :  { %s352_s7 = sld [smem:[#allocation3 + $0x1]] }
  0x10   :  { %s508_s8 = sld [smem:[#allocation3 + $0x2]] }
  0x11   :  { %s510_s9 = sld [smem:[#allocation3 + $0x3]] }
  0x12   :  { %s512_s10 = sld [smem:[#allocation3 + $0x4]] }
  0x13   :  { %s514_s11 = sld [smem:[#allocation7]]  ;;  %v69_v1 = vstv %s68_s1 }
  0x14   :  { %s356_s3 = sld [smem:[#allocation3 + $0x80]]  ;;  %v70_v3 = vmul.f32 %v69_v1, %v523_v0  ;;  %v72_v5 = vstv %s71_s2 }
  0x15   :  { %s357_s12 = sld [smem:[#allocation5 + $0x1]]  ;;  %v75_v6 = vstv %s352_s7 }
  0x16   :  { %s358_s13 = sld [smem:[#allocation3 + $0x81]]  ;;  %v73_v10 = vadd.f32 %v72_v5, %v70_v3  ;;  %v76_v11 = vmul.f32 %v535_v4, %v75_v6  ;;  %v79_v13 = vstv %s508_s8 }
  0x17   :  { %s516_s14 = sld [smem:[#allocation3 + $0x82]]  ;;  %v80_v22 = vmul.f32 %v548_v12, %v79_v13  ;;  %v83_v24 = vstv %s510_s9 }
  0x18   :  { %s518_s15 = sld [smem:[#allocation3 + $0x83]]  ;;  %v77_v21 = vadd.f32 %v76_v11, %v73_v10  ;;  %v84_v32 = vmul.f32 %v563_v23, %v83_v24  ;;  %v87_v33 = vstv %s512_s10 }
  0x19   :  { %s525_s18 = sld [smem:[#allocation3 + $0x84]]  ;;  %v88_v49 = vmul.f32 %v586_v39, %v87_v33 }
  0x1a   :  { %v96_v2 = vstv %s356_s3  ;;  %s527_s19 = sld [smem:[#allocation7 + $0x1]]  ;;  %v81_v31 = vadd.f32 %v80_v22, %v77_v21 }
  0x1b   :  { %s363_s20 = sld [smem:[#allocation3 + $0x100]]  ;;  %v97_v7 = vmul.f32 %v96_v2, %v523_v0  ;;  %v99_v8 = vstv %s357_s12 }
  0x1c   :  { %s530_s21 = sld [smem:[#allocation5 + $0x2]]  ;;  %v102_v9 = vstv %s358_s13  ;;  %v85_v48 = vadd.f32 %v84_v32, %v81_v31 }
  0x1d   :  { %s365_s24 = sld [smem:[#allocation3 + $0x101]]  ;;  %v100_v14 = vadd.f32 %v99_v8, %v97_v7  ;;  %v103_v15 = vmul.f32 %v535_v4, %v102_v9  ;;  %v106_v17 = vstv %s516_s14 }
  0x1e   :  { %s538_s25 = sld [smem:[#allocation3 + $0x102]]  ;;  %v107_v26 = vmul.f32 %v548_v12, %v106_v17  ;;  %v110_v27 = vstv %s518_s15  ;;  %v89_v61 = vadd.f32 %v88_v49, %v85_v48 }
  0x1f   :  { %s540_s26 = sld [smem:[#allocation3 + $0x103]]  ;;  %v104_v25 = vadd.f32 %v103_v15, %v100_v14  ;;  %v111_v36 = vmul.f32 %v563_v23, %v110_v27  ;;  %v114_v40 = vstv %s525_s18  ;;  %v92_v14 = vstv %s514_s11 }
  0x20   :  { %s543_s27 = sld [smem:[#allocation3 + $0x104]]  ;;  %v115_v51 = vmul.f32 %v586_v39, %v114_v40  ;;  %v91_v13 = vmax.f32 %v89_v61, 0.0  ;;  %v119_v17 = vstv %s527_s19 }
  0x21   :  { %v123_v16 = vstv %s363_s20  ;;  %s552_s30 = sld [smem:[#allocation7 + $0x2]]  ;;  %v108_v35 = vadd.f32 %v107_v26, %v104_v25 }
  0x22   :  { %v124_v18 = vmul.f32 %v123_v16, %v523_v0  ;;  %s370_s6 = sld [smem:[#allocation3 + $0x180]]  ;;  %v126_v19 = vstv %s530_s21  ;;  %v93_v32 = vmul.f32 %v92_v14, %v91_v13 }
  0x23   :  { %v129_v20 = vstv %s365_s24  ;;  %s557_s1 = sld [smem:[#allocation5 + $0x3]]  ;;  %v112_v50 = vadd.f32 %v111_v36, %v108_v35 }
  0x24   :  { %s372_s2 = sld [smem:[#allocation3 + $0x181]]  ;;  %v127_v28 = vadd.f32 %v126_v19, %v124_v18  ;;  %v130_v29 = vmul.f32 %v535_v4, %v129_v20  ;;  %v133_v30 = vstv %s538_s25 }
  0x25   :  { %s567_s3 = sld [smem:[#allocation3 + $0x182]]  ;;  %v134_v42 = vmul.f32 %v548_v12, %v133_v30  ;;  %v137_v44 = vstv %s540_s26  ;;  %v116_v62 = vadd.f32 %v115_v51, %v112_v50 }
  0x26   :  { %s571_s12 = sld [smem:[#allocation3 + $0x183]]  ;;  %v131_v41 = vadd.f32 %v130_v29, %v127_v28  ;;  %v138_v53 = vmul.f32 %v563_v23, %v137_v44  ;;  %v141_v54 = vstv %s543_s27 }
  0x27   :  { %s574_s13 = sld [smem:[#allocation3 + $0x184]]  ;;  %v142_v63 = vmul.f32 %v586_v39, %v141_v54  ;;  %v118_v16 = vmax.f32 %v116_v62, 0.0  ;;  %v146_v40 = vstv %s552_s30 }
  0x28   :  { %v150_v34 = vstv %s370_s6  ;;  %s578_s9 = sld [smem:[#allocation7 + $0x3]]  ;;  %v135_v52 = vadd.f32 %v134_v42, %v131_v41 }
  0x29   :  { %v151_v37 = vmul.f32 %v150_v34, %v523_v0  ;;  %v153_v38 = vstv %s557_s1  ;;  %s377_s14 = sld [smem:[#allocation3 + $0x200]]  ;;  %v120_v33 = vmul.f32 %v119_v17, %v118_v16 }
  0x2a   :  { %v156_v43 = vstv %s372_s2  ;;  %s378_s10 = sld [smem:[#allocation5 + $0x4]]  ;;  %v139_v2 = vadd.f32 %v138_v53, %v135_v52 }
  0x2b   :  { %v154_v45 = vadd.f32 %v153_v38, %v151_v37  ;;  %v157_v46 = vmul.f32 %v535_v4, %v156_v43  ;;  %s379_s17 = sld [smem:[#allocation3 + $0x201]]  ;;  %v160_v47 = vstv %s567_s3 }
  0x2c   :  { %s593_s20 = sld [smem:[#allocation3 + $0x202]]  ;;  %v161_v56 = vmul.f32 %v548_v12, %v160_v47  ;;  %v164_v58 = vstv %s571_s12  ;;  %v143_v18 = vadd.f32 %v142_v63, %v139_v2 }
  0x2d   :  { %s597_s0 = sld [smem:[#allocation3 + $0x203]]  ;;  %v158_v55 = vadd.f32 %v157_v46, %v154_v45  ;;  %v165_v8 = vmul.f32 %v563_v23, %v164_v58  ;;  %v168_v9 = vstv %s574_s13  ;;  %v121_v46 = vadd.f32 %v120_v33, %v93_v32 }
  0x2e   :  { %s601_s18 = sld [smem:[#allocation3 + $0x204]]  ;;  %v169_v21 = vmul.f32 %v586_v39, %v168_v9  ;;  %v145_v36 = vmax.f32 %v143_v18, 0.0  ;;  %v173_v52 = vstv %s578_s9 }
  0x2f   :  { %v177_v57 = vstv %s377_s14  ;;  %s604_s21 = sld [smem:[#allocation7 + $0x4]]  ;;  %v162_v7 = vadd.f32 %v161_v56, %v158_v55 }
  0x30   :  { %v178_v59 = vmul.f32 %v177_v57, %v523_v0  ;;  %v180_v60 = vstv %s378_s10  ;;  %s384_s22 = sld [smem:[#allocation3 + $0x280]]  ;;  %v147_v50 = vmul.f32 %v146_v40, %v145_v36 }
  0x31   :  { %v183_v1 = vstv %s379_s17  ;;  %s609_s23 = sld [smem:[#allocation5 + $0x5]]  ;;  %v166_v20 = vadd.f32 %v165_v8, %v162_v7 }
  0x32   :  { %v181_v3 = vadd.f32 %v180_v60, %v178_v59  ;;  %v184_v5 = vmul.f32 %v535_v4, %v183_v1  ;;  %v187_v6 = vstv %s593_s20  ;;  %s386_s24 = sld [smem:[#allocation3 + $0x281]]  ;;  %v148_v1 = vadd.f32 %v147_v50, %v121_v46 }
  0x33   :  { %s387_s25 = sld [smem:[#allocation3 + $0x282]]  ;;  %v188_v11 = vmul.f32 %v548_v12, %v187_v6  ;;  %v191_v15 = vstv %s597_s0  ;;  %v170_v37 = vadd.f32 %v169_v21, %v166_v20 }
  0x34   :  { %v185_v10 = vadd.f32 %v184_v5, %v181_v3  ;;  %s616_s26 = sld [smem:[#allocation3 + $0x283]]  ;;  %v192_v26 = vmul.f32 %v563_v23, %v191_v15  ;;  %v195_v28 = vstv %s601_s18 }
  0x35   :  { %s620_s27 = sld [smem:[#allocation3 + $0x284]]  ;;  %v196_v42 = vmul.f32 %v586_v39, %v195_v28  ;;  %v172_v51 = vmax.f32 %v170_v37, 0.0  ;;  %v200_v8 = vstv %s604_s21 }
  0x36   :  { %v204_v19 = vstv %s384_s22  ;;  %s623_s28 = sld [smem:[#allocation7 + $0x5]]  ;;  %v189_v25 = vadd.f32 %v188_v11, %v185_v10 }
  0x37   :  { %v205_v22 = vmul.f32 %v204_v19, %v523_v0  ;;  %v207_v24 = vstv %s609_s23  ;;  %s391_s29 = sld [smem:[#allocation3 + $0x300]]  ;;  %v174_v3 = vmul.f32 %v173_v52, %v172_v51 }
  0x38   :  { %v210_v27 = vstv %s386_s24  ;;  %s629_s11 = sld [smem:[#allocation5 + $0x6]]  ;;  %v193_v41 = vadd.f32 %v192_v26, %v189_v25 }
  0x39   :  { %v208_v29 = vadd.f32 %v207_v24, %v205_v22  ;;  %v211_v30 = vmul.f32 %v535_v4, %v210_v27  ;;  %v214_v31 = vstv %s387_s25  ;;  %s393_s19 = sld [smem:[#allocation3 + $0x301]]  ;;  %v175_v19 = vadd.f32 %v174_v3, %v148_v1 }
  0x3a   :  { %v215_v34 = vmul.f32 %v548_v12, %v214_v31  ;;  %v218_v35 = vstv %s616_s26  ;;  %s394_s6 = sld [smem:[#allocation3 + $0x302]]  ;;  %v197_v54 = vadd.f32 %v196_v42, %v193_v41 }
  0x3b   :  { %v212_v38 = vadd.f32 %v211_v30, %v208_v29  ;;  %s395_s1 = sld [smem:[#allocation3 + $0x303]]  ;;  %v219_v44 = vmul.f32 %v563_v23, %v218_v35  ;;  %v222_v47 = vstv %s620_s27 }
  0x3c   :  { %s637_s2 = sld [smem:[#allocation3 + $0x304]]  ;;  %v223_v59 = vmul.f32 %v586_v39, %v222_v47  ;;  %v199_v5 = vmax.f32 %v197_v54, 0.0  ;;  %v227_v28 = vstv %s623_s28 }
  0x3d   :  { %v216_v43 = vadd.f32 %v215_v34, %v212_v38  ;;  %v231_v45 = vstv %s391_s29  ;;  %s640_s7 = sld [smem:[#allocation7 + $0x6]] }
  0x3e   :  { %v232_v48 = vmul.f32 %v231_v45, %v523_v0  ;;  %v234_v49 = vstv %s629_s11  ;;  %s398_s8 = sld [smem:[#allocation3 + $0x380]]  ;;  %v201_v20 = vmul.f32 %v200_v8, %v199_v5 }
  0x3f   :  { %v237_v53 = vstv %s393_s19  ;;  %s646_s30 = sld [smem:[#allocation5 + $0x7]]  ;;  %v220_v58 = vadd.f32 %v219_v44, %v216_v43 }
  0x40   :  { %v235_v55 = vadd.f32 %v234_v49, %v232_v48  ;;  %v238_v56 = vmul.f32 %v535_v4, %v237_v53  ;;  %v241_v57 = vstv %s394_s6  ;;  %s400_s3 = sld [smem:[#allocation3 + $0x381]]  ;;  %v202_v35 = vadd.f32 %v201_v20, %v175_v19 }
  0x41   :  { %v242_v60 = vmul.f32 %v548_v12, %v241_v57  ;;  %v245_v61 = vstv %s395_s1  ;;  %s401_s12 = sld [smem:[#allocation3 + $0x382]]  ;;  %v224_v9 = vadd.f32 %v223_v59, %v220_v58 }
  0x42   :  { %v239_v62 = vadd.f32 %v238_v56, %v235_v55  ;;  %v246_v63 = vmul.f32 %v563_v23, %v245_v61  ;;  %s402_s13 = sld [smem:[#allocation3 + $0x383]]  ;;  %v249_v2 = vstv %s637_s2 }
  0x43   :  { %s653_s9 = sld [smem:[#allocation3 + $0x384]]  ;;  %v250_v14 = vmul.f32 %v586_v39, %v249_v2  ;;  %v226_v24 = vmax.f32 %v224_v9, 0.0  ;;  %v254_v44 = vstv %s640_s7 }
  0x44   :  { %v243_v6 = vadd.f32 %v242_v60, %v239_v62  ;;  %v258_v7 = vstv %s398_s8  ;;  %s655_s14 = sld [smem:[#allocation7 + $0x7]] }
  0x45   :  { %v259_v10 = vmul.f32 %v258_v7, %v523_v0  ;;  %v261_v11 = vstv %s646_s30  ;;  %s405_s15 = sld [smem:[#allocation3 + $0x400]]  ;;  %v228_v36 = vmul.f32 %v227_v28, %v226_v24 }
  0x46   :  { %v247_v13 = vadd.f32 %v246_v63, %v243_v6  ;;  %v264_v15 = vstv %s400_s3  ;;  %s661_s16 = sld [smem:[#allocation5 + $0x8]] }
  0x47   :  { %v262_v16 = vadd.f32 %v261_v11, %v259_v10  ;;  %v265_v17 = vmul.f32 %v535_v4, %v264_v15  ;;  %v268_v18 = vstv %s401_s12  ;;  %s407_s10 = sld [smem:[#allocation3 + $0x401]]  ;;  %v229_v51 = vadd.f32 %v228_v36, %v202_v35 }
  0x48   :  { %v269_v21 = vmul.f32 %v548_v12, %v268_v18  ;;  %v272_v22 = vstv %s402_s13  ;;  %s408_s17 = sld [smem:[#allocation3 + $0x402]]  ;;  %v251_v29 = vadd.f32 %v250_v14, %v247_v13 }
  0x49   :  { %v266_v25 = vadd.f32 %v265_v17, %v262_v16  ;;  %v273_v26 = vmul.f32 %v563_v23, %v272_v22  ;;  %v276_v27 = vstv %s653_s9  ;;  %s409_s20 = sld [smem:[#allocation3 + $0x403]] }
  0x4a   :  { %s668_s0 = sld [smem:[#allocation3 + $0x404]]  ;;  %v277_v31 = vmul.f32 %v586_v39, %v276_v27  ;;  %v253_v40 = vmax.f32 %v251_v29, 0.0  ;;  %v281_v59 = vstv %s655_s14 }
  0x4b   :  { %v270_v30 = vadd.f32 %v269_v21, %v266_v25  ;;  %v285_v32 = vstv %s405_s15  ;;  %s671_s18 = sld [smem:[#allocation7 + $0x8]]  ;;  %v339_v21 = vstv %s698_s4 }
  0x4c   :  { %v286_v33 = vmul.f32 %v285_v32, %v523_v0  ;;  %v288_v34 = vstv %s661_s16  ;;  %s412_s21 = sld [smem:[#allocation3 + $0x480]]  ;;  %v255_v52 = vmul.f32 %v254_v44, %v253_v40 }
  0x4d   :  { %v274_v37 = vadd.f32 %v273_v26, %v270_v30  ;;  %v291_v38 = vstv %s407_s10  ;;  %s413_s22 = sld [smem:[#allocation5 + $0x9]] }
  0x4e   :  { %v289_v41 = vadd.f32 %v288_v34, %v286_v33  ;;  %v292_v42 = vmul.f32 %v535_v4, %v291_v38  ;;  %v295_v43 = vstv %s408_s17  ;;  %s414_s23 = sld [smem:[#allocation3 + $0x481]]  ;;  %v256_v2 = vadd.f32 %v255_v52, %v229_v51 }
  0x4f   :  { %v278_v45 = vadd.f32 %v277_v31, %v274_v37  ;;  %v296_v46 = vmul.f32 %v548_v12, %v295_v43  ;;  %v299_v47 = vstv %s409_s20  ;;  %s415_s24 = sld [smem:[#allocation3 + $0x482]] }
  0x50   :  { %v293_v48 = vadd.f32 %v292_v42, %v289_v41  ;;  %v300_v49 = vmul.f32 %v563_v23, %v299_v47  ;;  %v303_v50 = vstv %s668_s0  ;;  %s416_s25 = sld [smem:[#allocation3 + $0x483]] }
  0x51   :  { %s417_s26 = sld [smem:[#allocation3 + $0x484]]  ;;  %v304_v54 = vmul.f32 %v586_v39, %v303_v50  ;;  %v280_v56 = vmax.f32 %v278_v45, 0.0  ;;  %v308_v11 = vstv %s671_s18 }
  0x52   :  { %v297_v53 = vadd.f32 %v296_v46, %v293_v48  ;;  %v312_v55 = vstv %s412_s21  ;;  %s418_s27 = sld [smem:[#allocation7 + $0x9]] }
  0x53   :  { %v313_v57 = vmul.f32 %v312_v55, %v523_v0  ;;  %v315_v58 = vstv %s413_s22  ;;  %v282_v7 = vmul.f32 %v281_v59, %v280_v56 }
  0x54   :  { %v301_v60 = vadd.f32 %v300_v49, %v297_v53  ;;  %v318_v61 = vstv %s414_s23 }
  0x55   :  { %v316_v62 = vadd.f32 %v315_v58, %v313_v57  ;;  %v319_v63 = vmul.f32 %v535_v4, %v318_v61  ;;  %v322_v1 = vstv %s415_s24  ;;  %v283_v15 = vadd.f32 %v282_v7, %v256_v2 }
  0x56   :  { %v305_v3 = vadd.f32 %v304_v54, %v301_v60  ;;  %v323_v5 = vmul.f32 %v548_v12, %v322_v1  ;;  %v326_v6 = vstv %s416_s25 }
  0x57   :  { %v320_v8 = vadd.f32 %v319_v63, %v316_v62  ;;  %v327_v9 = vmul.f32 %v563_v23, %v326_v6  ;;  %v330_v0 = vstv %s417_s26 }
  0x58   :  { %v307_v10 = vmax.f32 %v305_v3, 0.0  ;;  %v331_v14 = vmul.f32 %v586_v39, %v330_v0  ;;  %v335_v18 = vstv %s418_s27 }
  0x59   :  { %v324_v13 = vadd.f32 %v323_v5, %v320_v8 }
  0x5a   :  { %v309_v16 = vmul.f32 %v308_v11, %v307_v10 }
  0x5b   :  { %v328_v4 = vadd.f32 %v327_v9, %v324_v13 }
  0x5c   :  { %v310_v19 = vadd.f32 %v309_v16, %v283_v15 }
  0x5d   :  { %v332_v17 = vadd.f32 %v331_v14, %v328_v4 }
  0x5f   :  { %v334_v20 = vmax.f32 %v332_v17, 0.0 }
  0x61   :  { %v336_v12 = vmul.f32 %v335_v18, %v334_v20 }
  0x63   :  { %v337_v22 = vadd.f32 %v336_v12, %v310_v19 }
  0x65   :  { %v340_v23 = vadd.f32 %v339_v21, %v337_v22 }
  0x67   :  { %341 = vst [vmem:[%s699_s5] sm:$0xff] %v340_v23 }
  0x68   :  { %346 = vsyncpa [#allocation4], 1 }
  0x69   :  { %347 = vsyncpa [#allocation6], 1 }

</bundles_post_ra>
